<compile_context>
chip_gen: v7x
topology: tpu7x:2x2x1
jax: 0.10.0
libtpu: 0.0.40
codegen_flags: <defaults>
</compile_context>

<pallas_src>
import functools

import jax
import jax.numpy as jnp
from jax import lax
from jax.experimental import pallas as pl
from jax.experimental.pallas import tpu as pltpu

_LANE = 128
_GOLDEN = 0x9E3779B9  # golden-ratio constant for seed mixing


def _uniform_hash_u32(idx, seed_u32):
    """Counter-based hash (murmur3 finalizer): unique index -> uniform uint32."""
    x = idx + seed_u32 * jnp.uint32(_GOLDEN)
    x = x ^ (x >> 16)
    x = x * jnp.uint32(0x85EBCA6B)
    x = x ^ (x >> 13)
    x = x * jnp.uint32(0xC2B2AE35)
    x = x ^ (x >> 16)
    return x


def _pe_dropout_kernel(seed_ref, x_ref, pe_ref, o_ref, *, keep_prob, tile, total):
    # x_ref: (B, tile) VMEM, pe_ref: (1, tile) VMEM (broadcast over batch),
    # seed_ref: (1,) SMEM.
    y = x_ref[...] + pe_ref[...]

    if keep_prob < 1.0:
        # Inverted dropout: keep with prob keep_prob, scale survivors 1/keep_prob.
        blk = pl.program_id(0)
        b_idx = lax.broadcasted_iota(jnp.int32, y.shape, 0).astype(jnp.uint32)
        l_idx = lax.broadcasted_iota(jnp.int32, y.shape, 1).astype(jnp.uint32)
        offset = jnp.uint32(tile) * blk.astype(jnp.uint32)
        gidx = b_idx * jnp.uint32(total) + offset + l_idx  # globally unique per element
        u = _uniform_hash_u32(gidx, seed_ref[0].astype(jnp.uint32))
        thresh = jnp.uint32(min(int(keep_prob * (2 ** 32)), 2 ** 32 - 1))
        scale = jnp.asarray(1.0 / keep_prob, dtype=y.dtype)
        y = jnp.where(u < thresh, y * scale, jnp.zeros_like(y))

    o_ref[...] = y


def _choose_tile(total, batch, itemsize, budget_bytes=2 * 1024 * 1024):
    """Largest lane-aligned tile dividing `total` with the x-block under budget.

    Budget is sized so (double-buffered x + pe + out) blocks comfortably fit the
    default scoped-VMEM limit on every generation (incl. v7x's 64 MiB VMEM)."""
    if total % _LANE != 0:
        return total  # single full block (block dim == array dim is allowed)
    max_elems = max(_LANE, budget_bytes // max(1, batch * itemsize))
    best = _LANE
    t = _LANE
    while t <= total and t <= max_elems:
        if total % t == 0:
            best = t
        t += _LANE
    return best


def positional_encoding_forward(x, pe, *, dropout_p=0.1, training=True, seed=0):
    """x: (B, T, D); pe: (1, max_len, D) with T <= max_len."""
    B, T, D = x.shape
    assert pe.shape[0] == 1 and pe.shape[2] == D and T <= pe.shape[1]
    L = T * D

    keep_prob = 1.0 if (not training or dropout_p == 0.0) else 1.0 - float(dropout_p)

    # Lane-dense 2-D layout: flatten (T, D) so the last dim maps onto 128 lanes
    # even for small d_model.
    x2 = x.reshape(B, L)
    tile = _choose_tile(L, B, x.dtype.itemsize)

    if L % _LANE == 0:
        # Window into the full positional table via BlockSpec — no HBM slice copy.
        pe2 = pe.reshape(1, pe.shape[1] * D)
    else:
        # Misaligned fallback: one full block; the slice is a no-op when T == max_len.
        pe2 = pe[:, :T, :].reshape(1, L)

    grid = (L // tile,)
    seed_arr = jnp.asarray([seed], dtype=jnp.int32)
    kernel = functools.partial(
        _pe_dropout_kernel, keep_prob=keep_prob, tile=tile, total=L
    )

    out2 = pl.pallas_call(
        kernel,
        out_shape=jax.ShapeDtypeStruct((B, L), x.dtype),
        grid=grid,
        in_specs=[
            pl.BlockSpec(memory_space=pltpu.SMEM),           # seed scalar
            pl.BlockSpec((B, tile), lambda t: (0, t)),        # x tile
            pl.BlockSpec((1, tile), lambda t: (0, t)),        # pe tile (same window)
        ],
        out_specs=pl.BlockSpec((B, tile), lambda t: (0, t)),
        compiler_params=pltpu.CompilerParams(
            dimension_semantics=("parallel",)                 # megacore on v7x
        ),
    )(seed_arr, x2, pe2)

    return out2.reshape(B, T, D)


if __name__ == "__main__":
    key = jax.random.PRNGKey(0)
    k_pe, k_x, k_pe2, k_x2 = jax.random.split(key, 4)

    # --- Case 1: module defaults (d_model=32, max_len=7), T == max_len -------
    d_model, max_len, batch, seq = 32, 7, 2, 7
    pe = jax.random.normal(k_pe, (1, max_len, d_model), dtype=jnp.float32)
    x = jax.random.normal(k_x, (batch, seq, d_model), dtype=jnp.float32)

    out_train = positional_encoding_forward(x, pe, dropout_p=0.1, training=True, seed=0)
    jax.block_until_ready(out_train)
    assert out_train.shape == (batch, seq, d_model)

    out_eval = positional_encoding_forward(x, pe, dropout_p=0.1, training=False)
    jax.block_until_ready(out_eval)
    ref = x + pe[:, :seq, :]
    assert jnp.allclose(out_eval, ref, atol=1e-6), "eval-mode mismatch"

    # Training-mode sanity: surviving entries equal (x+pe)/keep_prob, rest are 0.
    kept = out_train != 0
    err = jnp.where(kept, out_train - ref / 0.9, 0.0)
    assert jnp.max(jnp.abs(err)) < 1e-5, "dropout scaling mismatch"
    assert jnp.mean(kept.astype(jnp.float32)) > 0.5, "dropout kept-fraction implausible"

    # --- Case 2: lane-aligned path with T < max_len (pe windowed via BlockSpec)
    d2, ml2, b2, t2 = 128, 16, 2, 8
    pe_b = jax.random.normal(k_pe2, (1, ml2, d2), dtype=jnp.float32)
    x_b = jax.random.normal(k_x2, (b2, t2, d2), dtype=jnp.float32)

    out_b_eval = positional_encoding_forward(x_b, pe_b, dropout_p=0.1, training=False)
    jax.block_until_ready(out_b_eval)
    assert jnp.allclose(out_b_eval, x_b + pe_b[:, :t2, :], atol=1e-6), "windowed pe mismatch"

    out_b_train = positional_encoding_forward(x_b, pe_b, dropout_p=0.1, training=True, seed=7)
    jax.block_until_ready(out_b_train)
    assert out_b_train.shape == (b2, t2, d2)

    print("KERNEL_OK")
</pallas_src>

<mosaic_0001>
module attributes {stable_mosaic.version = 11 : i64} {
  func.func @_pe_dropout_kernel(%arg0: i32, %arg1: memref<1xi32, #tpu.memory_space<smem>>, %arg2: memref<2x224xf32, #tpu.memory_space<vmem>>, %arg3: memref<1x224xf32, #tpu.memory_space<vmem>>, %arg4: memref<2x224xf32, #tpu.memory_space<vmem>>) attributes {dimension_semantics = [#tpu.dimension_semantics<parallel>], iteration_bounds = array<i64: 1>, scalar_prefetch = 0 : i64, scratch_operands = 0 : i64, tpu.core_type = #tpu.core_type<tc>, window_params = [{transform_indices = @transform_0, window_bounds = array<i64: 1>}, {transform_indices = @transform_1, window_bounds = array<i64: 2, 224>}, {transform_indices = @transform_2, window_bounds = array<i64: 1, 224>}, {transform_indices = @transform_3, window_bounds = array<i64: 2, 224>}]} {
    %c0 = arith.constant 0 : index
    %c0_0 = arith.constant 0 : index
    %0 = vector.load %arg2[%c0, %c0_0] : memref<2x224xf32, #tpu.memory_space<vmem>>, vector<2x224xf32>
    %c0_1 = arith.constant 0 : index
    %c0_2 = arith.constant 0 : index
    %1 = vector.load %arg3[%c0_1, %c0_2] : memref<1x224xf32, #tpu.memory_space<vmem>>, vector<1x224xf32>
    %2 = vector.broadcast %1 : vector<1x224xf32> to vector<2x224xf32>
    %3 = arith.addf %0, %2 : vector<2x224xf32>
    %4 = tpu.iota {dimensions = array<i32: 0>} : vector<2x224xi32>
    %5 = tpu.iota {dimensions = array<i32: 1>} : vector<2x224xi32>
    %c224_i32 = arith.constant 224 : i32
    %6 = arith.muli %c224_i32, %arg0 : i32
    %c224_i32_3 = arith.constant 224 : i32
    %7 = vector.broadcast %c224_i32_3 : i32 to vector<2x224xi32>
    %8 = arith.muli %4, %7 : vector<2x224xi32>
    %9 = vector.broadcast %6 : i32 to vector<2x224xi32>
    %10 = arith.addi %8, %9 : vector<2x224xi32>
    %11 = arith.addi %10, %5 : vector<2x224xi32>
    %c0_4 = arith.constant 0 : index
    %12 = memref.load %arg1[%c0_4] : memref<1xi32, #tpu.memory_space<smem>>
    %c-1640531527_i32 = arith.constant -1640531527 : i32
    %13 = arith.muli %12, %c-1640531527_i32 : i32
    %14 = vector.broadcast %13 : i32 to vector<2x224xi32>
    %15 = arith.addi %11, %14 : vector<2x224xi32>
    %c16_i32 = arith.constant 16 : i32
    %16 = vector.broadcast %c16_i32 : i32 to vector<2x224xi32>
    %17 = arith.shrui %15, %16 : vector<2x224xi32>
    %18 = arith.xori %15, %17 : vector<2x224xi32>
    %c-2048144789_i32 = arith.constant -2048144789 : i32
    %19 = vector.broadcast %c-2048144789_i32 : i32 to vector<2x224xi32>
    %20 = arith.muli %18, %19 : vector<2x224xi32>
    %c13_i32 = arith.constant 13 : i32
    %21 = vector.broadcast %c13_i32 : i32 to vector<2x224xi32>
    %22 = arith.shrui %20, %21 : vector<2x224xi32>
    %23 = arith.xori %20, %22 : vector<2x224xi32>
    %c-1028477387_i32 = arith.constant -1028477387 : i32
    %24 = vector.broadcast %c-1028477387_i32 : i32 to vector<2x224xi32>
    %25 = arith.muli %23, %24 : vector<2x224xi32>
    %c16_i32_5 = arith.constant 16 : i32
    %26 = vector.broadcast %c16_i32_5 : i32 to vector<2x224xi32>
    %27 = arith.shrui %25, %26 : vector<2x224xi32>
    %28 = arith.xori %25, %27 : vector<2x224xi32>
    %c-429496730_i32 = arith.constant -429496730 : i32
    %29 = vector.broadcast %c-429496730_i32 : i32 to vector<2x224xi32>
    %30 = arith.cmpi ult, %28, %29 : vector<2x224xi32>
    %cst = arith.constant 1.11111116 : f32
    %31 = vector.broadcast %cst : f32 to vector<2x224xf32>
    %32 = arith.mulf %3, %31 : vector<2x224xf32>
    %cst_6 = arith.constant 0.000000e+00 : f32
    %33 = vector.broadcast %cst_6 : f32 to vector<2x224xf32>
    %34 = arith.select %30, %32, %33 : vector<2x224xi1>, vector<2x224xf32>
    %c0_7 = arith.constant 0 : index
    %c0_8 = arith.constant 0 : index
    %35 = vector.load %arg4[%c0_7, %c0_8] : memref<2x224xf32, #tpu.memory_space<vmem>>, vector<2x224xf32>
    tpu.vector_store %arg4[%c0_7, %c0_8], %34 {strides = array<i32>} : memref<2x224xf32, #tpu.memory_space<vmem>>, vector<2x224xf32>,
    return
  }
  func.func @transform_0(%arg0: i32) -> i32 {
    %c0_i32 = arith.constant 0 : i32
    %c0_i32_0 = arith.constant 0 : i32
    return %c0_i32 : i32
  }
  func.func @transform_1(%arg0: i32) -> (i32, i32) {
    %c0_i32 = arith.constant 0 : i32
    %c0_i32_0 = arith.constant 0 : i32
    return %c0_i32, %arg0 : i32, i32
  }
  func.func @transform_2(%arg0: i32) -> (i32, i32) {
    %c0_i32 = arith.constant 0 : i32
    %c0_i32_0 = arith.constant 0 : i32
    return %c0_i32, %arg0 : i32, i32
  }
  func.func @transform_3(%arg0: i32) -> (i32, i32) {
    %c0_i32 = arith.constant 0 : i32
    %c0_i32_0 = arith.constant 0 : i32
    return %c0_i32, %arg0 : i32, i32
  }
}

</mosaic_0001>

<bundles_post_ra>
// kernel: tpu_custom_call.1
= control target key start
LH: loop header
LB: loop body
LE: loop exit
PB: predicated region body
PF: predicated region fallthrough
CT: control target
= control target key end

     0   :  { %9 = vsyncpa [#allocation4], 0  ;;  %s231_s0 = inlined_call_operand.<no memory space> [shape: s32[1], index: 0, kind: input, shape index: {}]   ;;  %s232_s1 = inlined_call_operand.hbm [shape: f32[2,224], index: 1, kind: input, shape index: {}]   ;;  %s233_s2 = inlined_call_operand.vmem [shape: f32[1,224], index: 2, kind: input, shape index: {}]   ;;  %s234_s3 = inlined_call_operand.hbm [shape: f32[2,224], index: 3, kind: output, shape index: {}]  }
   0x1   :  { %10 = vsyncpa [#allocation5], 0  ;;  %s178_s12 = smov [#allocation3]   ;;  %s130_s16 = scalar_lea.hbm %s232_s1, 64 }
   0x2   :  { %s19_s13 = sshll.u32 %s178_s12, 4  ;;  %p131_p0 = scmp.ne.s32.totalorder %s232_s1, %s130_s16  ;;  %s20_s13 = int_to_ptr.vmem [resolvable:$true] %s19_s13 }
   0x3   :  { %p134_p1 = scmp.lt.u32.totalorder %s130_s16, %s232_s1 }
   0x5   :  { %p136_p2 = pnand %p134_p1, %p131_p0 }
   0x7   :  { %139 = shalt.err (!%p136_p2)
}
   0x8   :  { %s140_s21 = scalar_lea.vmem %s20_s13, 64  ;;  %p145_p4 = scmp.lt.s32.totalorder %s20_s13, %s20_s13 }
   0x9   :  { %p141_p3 = scmp.ne.s32.totalorder %s20_s13, %s140_s21  ;;  %p146_p5 = scmp.lt.s32.totalorder %s140_s21, %s140_s21 }
   0xb   :  { %p147_p6 = por %p146_p5, %p145_p4 }
   0xd   :  { %p148_p7 = pnand %p147_p6, %p141_p3 }
   0xf   :  { %151 = shalt.err (!%p148_p7)
}
  0x10   :  { %22 = dma.hbm_to_vmem [thread:$0]  %s232_s1, 64, %s20_s13, [#allocation4]  }
  0x11   :  { %174 = dma.done.wait [#allocation4], 64  }
  0x12   :  { %175 = vsyncadd [#allocation4], 4294967232  ;;  %v31_v0 = vlaneseq  ;;  %v179_v1 = vmov 1983009808   ;;  %s61_s26 = smul.u32 2654435769, %s231_s0 }
  0x13   :  { %v41_v2 = vunpack.c.l.s4 %v179_v1  ;;  %v29_v13 = vld [vmem:[%s233_s2] sm:$0x3]  ;;  %vm108_vm2 = vcmask 1041408   ;;  %vm109_vm3 = vcmask 781314   ;;  %s180_s0 = smov [#allocation6]  }
  0x14   :  { %v32_v3 = vshrl.u32 %v31_v0, 7  ;;  %v52_v4 = vand.u32 127, %v31_v0  ;;  %v62_v10 = vstv %s61_s26  ;;  %v28_v22 = vld [vmem:[#allocation3] sm:$0xf]  ;;  %s118_s2 = sshll.u32 %s180_s0, 4  ;;  %vm110_vm4 = vmor %vm109_vm3, %vm108_vm2  ;;  %s119_s2 = int_to_ptr.vmem [resolvable:$true] %s118_s2 }
  0x15   :  { %v42_v5 = vunpack.c.0.s8 %v41_v2  ;;  %s152_s28 = scalar_lea.vmem %s119_s2, 64  ;;  %p157_p9 = scmp.lt.s32.totalorder %s119_s2, %s119_s2 }
  0x16   :  { %v33_v6 = vsub.s32 0, %v32_v3  ;;  %v37_v7 = vsub.s32 1, %v32_v3  ;;  %v53_v8 = vadd.s32 128, %v52_v4  ;;  %v55_v9 = vmul.u32 224, %v32_v3  ;;  %p153_p8 = scmp.ne.s32.totalorder %s119_s2, %s152_s28  ;;  %p158_p10 = scmp.lt.s32.totalorder %s152_s28, %s152_s28 }
  0x17   :  { %v45_v14 = vsub.s32 %v42_v5, %v32_v3 }
  0x18   :  { %v58_v11 = vadd.s32 %v55_v9, %v52_v4  ;;  %v59_v12 = vadd.s32 %v55_v9, %v53_v8  ;;  %v34_v15 = vrot.slane %v29_v13, %v33_v6  ;;  %v38_v16 = vrot.slane %v29_v13, %v37_v7  ;;  %p159_p11 = por %p158_p10, %p157_p9 }
  0x1a   :  { %v63_v17 = vadd.s32 %v62_v10, %v58_v11  ;;  %v64_v18 = vadd.s32 %v62_v10, %v59_v12  ;;  %v39_v19 = vcombine.low %v34_v15, %v38_v16  ;;  %p160_p12 = pnand %p159_p11, %p153_p8 }
  0x1c   :  { %v65_v20 = vshrl.u32 %v63_v17, 16  ;;  %v66_v21 = vshrl.u32 %v64_v18, 16  ;;  %v46_v23 = vrot.slane %v39_v19, %v45_v14 }
  0x1e   :  { %v67_v24 = vxor.u32 %v65_v20, %v63_v17  ;;  %v68_v25 = vxor.u32 %v66_v21, %v64_v18  ;;  %v48_v26 = vadd.f32 %v46_v23, %v28_v22 }
  0x20   :  { %v69_v27 = vmul.u32 2246822507, %v67_v24  ;;  %v70_v28 = vmul.u32 2246822507, %v68_v25  ;;  %v83_v31 = vmul.f32 1.1111112, %v48_v26 }
  0x22   :  { %v71_v29 = vshrl.u32 %v69_v27, 13  ;;  %v72_v30 = vshrl.u32 %v70_v28, 13  ;;  %v91_v34 = vrot.slane %v83_v31, %v45_v14 }
  0x24   :  { %v73_v32 = vxor.u32 %v71_v29, %v69_v27  ;;  %v74_v33 = vxor.u32 %v72_v30, %v70_v28  ;;  %v92_v39 = vcombine.high %v91_v34, %v91_v34 }
  0x26   :  { %v75_v35 = vmul.u32 3266489909, %v73_v32  ;;  %v76_v36 = vmul.u32 3266489909, %v74_v33 }
  0x28   :  { %v77_v37 = vshrl.u32 %v75_v35, 16  ;;  %v78_v38 = vshrl.u32 %v76_v36, 16 }
  0x2a   :  { %v79_v40 = vxor.u32 %v77_v37, %v75_v35  ;;  %v80_v41 = vxor.u32 %v78_v38, %v76_v36 }
  0x2c   :  { %vm81_vm0 = vcmp.lt.u32.totalorder %v79_v40, 3865470566  ;;  %vm82_vm1 = vcmp.lt.u32.totalorder %v80_v41, 3865470566 }
  0x2d   :  { %v95_v42 = vsel %vm81_vm0, %v91_v34, 0.0  ;;  %v96_v43 = vsel %vm82_vm1, %v92_v39, 0.0 }
  0x2e   :  { %v99_v44 = vcombine.low %v95_v42, %v96_v43 }
  0x30   :  { %v106_v45 = vrot.slane %v99_v44, %v45_v14 }
  0x32   :  { %111 = vst.msk [vmem:[#allocation6] sm:$0xf] %vm110_vm4, %v106_v45 }
  0x33   :  { %163 = shalt.err (!%p160_p12)
}
  0x34   :  { %s164_s4 = scalar_lea.hbm %s234_s3, 64 }
  0x35   :  { %p165_p13 = scmp.ne.s32.totalorder %s234_s3, %s164_s4  ;;  %p168_p0 = scmp.lt.u32.totalorder %s164_s4, %s234_s3 }
  0x37   :  { %p170_p1 = pnand %p168_p0, %p165_p13 }
  0x39   :  { %173 = shalt.err (!%p170_p1)
}
  0x3a   :  { %121 = dma.vmem_to_hbm [thread:$0]  %s119_s2, 64, %s234_s3, [#allocation5]  }
  0x3b   :  { %176 = dma.done.wait [#allocation5], 64  }
  0x3c   :  { %177 = vsyncadd [#allocation5], 4294967232 }
  0x3d   :  { %125 = vsyncpa [#allocation4], 1 }
  0x3e   :  { %126 = vsyncpa [#allocation5], 1 }

</bundles_post_ra>
